<compile_context>
chip_gen: v6e
topology: v6e:2x2x1
jax: 0.10.0
libtpu: 0.0.40
codegen_flags: <defaults>
</compile_context>

<pallas_src>
import functools

import jax
import jax.numpy as jnp
from jax import lax
from jax.experimental import pallas as pl
from jax.experimental.pallas import tpu as pltpu  # noqa: F401  (TPU backend)


def _lstm_kernel(x_ref, wih_ref, whh_ref, b_ref, h_out_ref, *,
                 seq_len, batch, batch_pad):
    """Single-invocation LSTM forward.

    x_ref:   (T*Bp, F)  time-major, batch padded to Bp (sublane tile):
                        row t*Bp + b  is  x[b, t, :]  (b < batch), zeros after.
    wih_ref: (F, 4H)    W_ih^T, gate columns reordered to [i, f, o, g]
    whh_ref: (H, 4H)    W_hh^T, same gate order
    b_ref:   (1, 4H)    b_ih + b_hh, same gate order
    h_out:   (B, H)     final hidden state h_T (unpadded batch)
    """
    T = seq_len
    B = batch
    Bp = batch_pad
    H = h_out_ref.shape[-1]

    # Hoisted, time-invariant input projection (one big MXU matmul) + bias.
    xw = (
        jnp.dot(x_ref[...], wih_ref[...], preferred_element_type=jnp.float32)
        + b_ref[...]
    )                                            # (T*Bp, 4H)

    # Recurrent weight loaded from VMEM once, reused every step.
    whh = whh_ref[...]                           # (H, 4H)

    h = jnp.zeros((Bp, H), jnp.float32)
    c = jnp.zeros((Bp, H), jnp.float32)

    # T is small & static -> fully unrolled recurrence; h/c live in vregs.
    # Gate order (after wrapper permute) is [i, f, o, g]: one sigmoid over the
    # first 3H columns, one tanh over the last H columns.
    for t in range(T):
        # t*Bp is a multiple of 8 -> sublane-tile-aligned slice (plain vld).
        gates = xw[t * Bp:(t + 1) * Bp, :] + jnp.dot(
            h, whh, preferred_element_type=jnp.float32
        )                                        # (Bp, 4H)
        sig = jax.nn.sigmoid(gates[:, : 3 * H])  # [i | f | o]
        g_g = jnp.tanh(gates[:, 3 * H:])         # g
        i_g = sig[:, 0 * H:1 * H]
        f_g = sig[:, 1 * H:2 * H]
        o_g = sig[:, 2 * H:3 * H]
        c = f_g * c + i_g * g_g
        h = o_g * jnp.tanh(c)

    h_out_ref[...] = h[:B, :].astype(h_out_ref.dtype)


def prepare_encoder_params(w_ih, w_hh, b_ih, b_hh):
    """One-time parameter layout prep (call at model init, not per forward).

    PyTorch layout in:  w_ih (4H, F), w_hh (4H, H), b_ih (4H,), b_hh (4H,)
    with gate row-order [i, f, g, o].
    Returns (wih_t, whh_t, bias) with gate order [i, f, o, g] and weights
    pre-transposed so every kernel matmul is a plain row-major MXU pass.
    """
    H4 = w_ih.shape[0]
    H = H4 // 4
    # Gate permutation [i, f, g, o] -> [i, f, o, g].
    perm = jnp.concatenate([
        jnp.arange(0 * H, 1 * H),
        jnp.arange(1 * H, 2 * H),
        jnp.arange(3 * H, 4 * H),
        jnp.arange(2 * H, 3 * H),
    ])
    wih_t = jnp.transpose(w_ih[perm, :], (1, 0))   # (F, 4H)
    whh_t = jnp.transpose(w_hh[perm, :], (1, 0))   # (H, 4H)
    bias = (b_ih + b_hh)[perm].reshape(1, H4)      # (1, 4H)
    return wih_t, whh_t, bias


@jax.jit
def encoder_forward(x, wih_t, whh_t, bias):
    """x: (B, T, F) float32; prepared params from prepare_encoder_params.
       Returns final hidden state (B, H)."""
    B, T, F = x.shape
    H4 = wih_t.shape[1]
    H = H4 // 4

    # Pad batch up to the 8-sublane tile so in-kernel per-step slices and all
    # VPU ops are tile-aligned / fully utilized.
    Bp = ((B + 7) // 8) * 8

    # Per-call layout plumbing (tiny): time-major + pad batch + flatten.
    x_tb = jnp.transpose(x, (1, 0, 2))                       # (T, B, F)
    x_tb = jnp.pad(x_tb, ((0, 0), (0, Bp - B), (0, 0)))      # (T, Bp, F)
    x_flat = x_tb.reshape(T * Bp, F)                         # (T*Bp, F)

    kernel = functools.partial(
        _lstm_kernel, seq_len=T, batch=B, batch_pad=Bp)

    # No grid: all operands are small and are mapped fully into VMEM once; the
    # entire T-step recurrence runs inside a single kernel invocation.
    return pl.pallas_call(
        kernel,
        out_shape=jax.ShapeDtypeStruct((B, H), jnp.float32),
    )(x_flat, wih_t, whh_t, bias)


def _encoder_ref(x, w_ih, w_hh, b_ih, b_hh):
    """Pure-JAX reference of the same LSTM (PyTorch gate order, for checks)."""
    B, T, F = x.shape
    H = w_hh.shape[1]

    def step(carry, x_t):
        h, c = carry
        gates = x_t @ w_ih.T + b_ih + h @ w_hh.T + b_hh
        i_g = jax.nn.sigmoid(gates[:, 0 * H:1 * H])
        f_g = jax.nn.sigmoid(gates[:, 1 * H:2 * H])
        g_g = jnp.tanh(gates[:, 2 * H:3 * H])
        o_g = jax.nn.sigmoid(gates[:, 3 * H:4 * H])
        c = f_g * c + i_g * g_g
        h = o_g * jnp.tanh(c)
        return (h, c), None

    init = (jnp.zeros((B, H), jnp.float32), jnp.zeros((B, H), jnp.float32))
    (h_T, _), _ = lax.scan(step, init, jnp.transpose(x, (1, 0, 2)))
    return h_T


if __name__ == "__main__":
    # Shapes consistent with Encoder(seq_len=8, no_features=4, embedding_size=32)
    batch, seq_len, no_features, embedding_size = 2, 8, 4, 32
    H4 = 4 * embedding_size

    key = jax.random.PRNGKey(0)
    kx, k1, k2, k3, k4 = jax.random.split(key, 5)

    # Deterministic parameter init (mimics PyTorch LSTM uniform(-1/sqrt(H), 1/sqrt(H)))
    bound = 1.0 / jnp.sqrt(jnp.float32(embedding_size))
    w_ih = jax.random.uniform(k1, (H4, no_features), jnp.float32, -bound, bound)
    w_hh = jax.random.uniform(k2, (H4, embedding_size), jnp.float32, -bound, bound)
    b_ih = jax.random.uniform(k3, (H4,), jnp.float32, -bound, bound)
    b_hh = jax.random.uniform(k4, (H4,), jnp.float32, -bound, bound)

    x = jax.random.normal(kx, (batch, seq_len, no_features), jnp.float32)

    # One-time weight layout prep (cached across forwards in real use).
    wih_t, whh_t, bias = prepare_encoder_params(w_ih, w_hh, b_ih, b_hh)
    wih_t, whh_t, bias = jax.block_until_ready((wih_t, whh_t, bias))

    h_last = encoder_forward(x, wih_t, whh_t, bias)
    jax.block_until_ready(h_last)

    h_ref = _encoder_ref(x, w_ih, w_hh, b_ih, b_hh)
    assert h_last.shape == (batch, embedding_size)
    assert jnp.allclose(h_last, h_ref, atol=1e-5, rtol=1e-5)

    print("KERNEL_OK")
</pallas_src>

<mosaic_0001>
module attributes {stable_mosaic.version = 11 : i64} {
  func.func @_lstm_kernel(%arg0: memref<64x4xf32, #tpu.memory_space<vmem>>, %arg1: memref<4x128xf32, #tpu.memory_space<vmem>>, %arg2: memref<32x128xf32, #tpu.memory_space<vmem>>, %arg3: memref<1x128xf32, #tpu.memory_space<vmem>>, %arg4: memref<2x32xf32, #tpu.memory_space<vmem>>) attributes {dimension_semantics = [], scalar_prefetch = 0 : i64, scratch_operands = 0 : i64, tpu.core_type = #tpu.core_type<tc>} {
    %c0 = arith.constant 0 : index
    %c0_0 = arith.constant 0 : index
    %0 = vector.load %arg0[%c0, %c0_0] : memref<64x4xf32, #tpu.memory_space<vmem>>, vector<64x4xf32>
    %c0_1 = arith.constant 0 : index
    %c0_2 = arith.constant 0 : index
    %1 = vector.load %arg1[%c0_1, %c0_2] : memref<4x128xf32, #tpu.memory_space<vmem>>, vector<4x128xf32>
    %cst = arith.constant dense<0.000000e+00> : vector<64x128xf32>
    %2 = tpu.matmul %0, %1, %cst {dimension_numbers = #tpu.dot_dimension_numbers<[1], [0], [0], [1], [0, 0, 1, 1], [], []>} : vector<64x4xf32>, vector<4x128xf32>, vector<64x128xf32> -> vector<64x128xf32>
    %c0_3 = arith.constant 0 : index
    %c0_4 = arith.constant 0 : index
    %3 = vector.load %arg3[%c0_3, %c0_4] : memref<1x128xf32, #tpu.memory_space<vmem>>, vector<1x128xf32>
    %4 = vector.broadcast %3 : vector<1x128xf32> to vector<64x128xf32>
    %5 = arith.addf %2, %4 : vector<64x128xf32>
    %c0_5 = arith.constant 0 : index
    %c0_6 = arith.constant 0 : index
    %6 = vector.load %arg2[%c0_5, %c0_6] : memref<32x128xf32, #tpu.memory_space<vmem>>, vector<32x128xf32>
    %cst_7 = arith.constant 0.000000e+00 : f32
    %7 = vector.broadcast %cst_7 : f32 to vector<8x32xf32>
    %cst_8 = arith.constant 0.000000e+00 : f32
    %8 = vector.broadcast %cst_8 : f32 to vector<8x32xf32>
    %9 = vector.extract_strided_slice %5 {offsets = [0, 0], sizes = [8, 128], strides = [1, 1]} : vector<64x128xf32> to vector<8x128xf32>
    %cst_9 = arith.constant dense<0.000000e+00> : vector<8x128xf32>
    %10 = tpu.matmul %7, %6, %cst_9 {dimension_numbers = #tpu.dot_dimension_numbers<[1], [0], [0], [1], [0, 0, 1, 1], [], []>} : vector<8x32xf32>, vector<32x128xf32>, vector<8x128xf32> -> vector<8x128xf32>
    %11 = arith.addf %9, %10 : vector<8x128xf32>
    %12 = vector.extract_strided_slice %11 {offsets = [0, 0], sizes = [8, 96], strides = [1, 1]} : vector<8x128xf32> to vector<8x96xf32>
    %13 = arith.negf %12 : vector<8x96xf32>
    %14 = math.exp %13 : vector<8x96xf32>
    %cst_10 = arith.constant 1.000000e+00 : f32
    %15 = vector.broadcast %cst_10 : f32 to vector<8x96xf32>
    %16 = arith.addf %15, %14 : vector<8x96xf32>
    %17 = arith.divf %15, %16 : vector<8x96xf32>
    %18 = vector.extract_strided_slice %11 {offsets = [0, 96], sizes = [8, 32], strides = [1, 1]} : vector<8x128xf32> to vector<8x32xf32>
    %19 = math.tanh %18 : vector<8x32xf32>
    %20 = vector.extract_strided_slice %17 {offsets = [0, 0], sizes = [8, 32], strides = [1, 1]} : vector<8x96xf32> to vector<8x32xf32>
    %21 = vector.extract_strided_slice %17 {offsets = [0, 32], sizes = [8, 32], strides = [1, 1]} : vector<8x96xf32> to vector<8x32xf32>
    %22 = vector.extract_strided_slice %17 {offsets = [0, 64], sizes = [8, 32], strides = [1, 1]} : vector<8x96xf32> to vector<8x32xf32>
    %23 = arith.mulf %21, %8 : vector<8x32xf32>
    %24 = arith.mulf %20, %19 : vector<8x32xf32>
    %25 = arith.addf %23, %24 : vector<8x32xf32>
    %26 = math.tanh %25 : vector<8x32xf32>
    %27 = arith.mulf %22, %26 : vector<8x32xf32>
    %28 = vector.extract_strided_slice %5 {offsets = [8, 0], sizes = [8, 128], strides = [1, 1]} : vector<64x128xf32> to vector<8x128xf32>
    %cst_11 = arith.constant dense<0.000000e+00> : vector<8x128xf32>
    %29 = tpu.matmul %27, %6, %cst_11 {dimension_numbers = #tpu.dot_dimension_numbers<[1], [0], [0], [1], [0, 0, 1, 1], [], []>} : vector<8x32xf32>, vector<32x128xf32>, vector<8x128xf32> -> vector<8x128xf32>
    %30 = arith.addf %28, %29 : vector<8x128xf32>
    %31 = vector.extract_strided_slice %30 {offsets = [0, 0], sizes = [8, 96], strides = [1, 1]} : vector<8x128xf32> to vector<8x96xf32>
    %32 = arith.negf %31 : vector<8x96xf32>
    %33 = math.exp %32 : vector<8x96xf32>
    %cst_12 = arith.constant 1.000000e+00 : f32
    %34 = vector.broadcast %cst_12 : f32 to vector<8x96xf32>
    %35 = arith.addf %34, %33 : vector<8x96xf32>
    %36 = arith.divf %34, %35 : vector<8x96xf32>
    %37 = vector.extract_strided_slice %30 {offsets = [0, 96], sizes = [8, 32], strides = [1, 1]} : vector<8x128xf32> to vector<8x32xf32>
    %38 = math.tanh %37 : vector<8x32xf32>
    %39 = vector.extract_strided_slice %36 {offsets = [0, 0], sizes = [8, 32], strides = [1, 1]} : vector<8x96xf32> to vector<8x32xf32>
    %40 = vector.extract_strided_slice %36 {offsets = [0, 32], sizes = [8, 32], strides = [1, 1]} : vector<8x96xf32> to vector<8x32xf32>
    %41 = vector.extract_strided_slice %36 {offsets = [0, 64], sizes = [8, 32], strides = [1, 1]} : vector<8x96xf32> to vector<8x32xf32>
    %42 = arith.mulf %40, %25 : vector<8x32xf32>
    %43 = arith.mulf %39, %38 : vector<8x32xf32>
    %44 = arith.addf %42, %43 : vector<8x32xf32>
    %45 = math.tanh %44 : vector<8x32xf32>
    %46 = arith.mulf %41, %45 : vector<8x32xf32>
    %47 = vector.extract_strided_slice %5 {offsets = [16, 0], sizes = [8, 128], strides = [1, 1]} : vector<64x128xf32> to vector<8x128xf32>
    %cst_13 = arith.constant dense<0.000000e+00> : vector<8x128xf32>
    %48 = tpu.matmul %46, %6, %cst_13 {dimension_numbers = #tpu.dot_dimension_numbers<[1], [0], [0], [1], [0, 0, 1, 1], [], []>} : vector<8x32xf32>, vector<32x128xf32>, vector<8x128xf32> -> vector<8x128xf32>
    %49 = arith.addf %47, %48 : vector<8x128xf32>
    %50 = vector.extract_strided_slice %49 {offsets = [0, 0], sizes = [8, 96], strides = [1, 1]} : vector<8x128xf32> to vector<8x96xf32>
    %51 = arith.negf %50 : vector<8x96xf32>
    %52 = math.exp %51 : vector<8x96xf32>
    %cst_14 = arith.constant 1.000000e+00 : f32
    %53 = vector.broadcast %cst_14 : f32 to vector<8x96xf32>
    %54 = arith.addf %53, %52 : vector<8x96xf32>
    %55 = arith.divf %53, %54 : vector<8x96xf32>
    %56 = vector.extract_strided_slice %49 {offsets = [0, 96], sizes = [8, 32], strides = [1, 1]} : vector<8x128xf32> to vector<8x32xf32>
    %57 = math.tanh %56 : vector<8x32xf32>
    %58 = vector.extract_strided_slice %55 {offsets = [0, 0], sizes = [8, 32], strides = [1, 1]} : vector<8x96xf32> to vector<8x32xf32>
    %59 = vector.extract_strided_slice %55 {offsets = [0, 32], sizes = [8, 32], strides = [1, 1]} : vector<8x96xf32> to vector<8x32xf32>
    %60 = vector.extract_strided_slice %55 {offsets = [0, 64], sizes = [8, 32], strides = [1, 1]} : vector<8x96xf32> to vector<8x32xf32>
    %61 = arith.mulf %59, %44 : vector<8x32xf32>
    %62 = arith.mulf %58, %57 : vector<8x32xf32>
    %63 = arith.addf %61, %62 : vector<8x32xf32>
    %64 = math.tanh %63 : vector<8x32xf32>
    %65 = arith.mulf %60, %64 : vector<8x32xf32>
    %66 = vector.extract_strided_slice %5 {offsets = [24, 0], sizes = [8, 128], strides = [1, 1]} : vector<64x128xf32> to vector<8x128xf32>
    %cst_15 = arith.constant dense<0.000000e+00> : vector<8x128xf32>
    %67 = tpu.matmul %65, %6, %cst_15 {dimension_numbers = #tpu.dot_dimension_numbers<[1], [0], [0], [1], [0, 0, 1, 1], [], []>} : vector<8x32xf32>, vector<32x128xf32>, vector<8x128xf32> -> vector<8x128xf32>
    %68 = arith.addf %66, %67 : vector<8x128xf32>
    %69 = vector.extract_strided_slice %68 {offsets = [0, 0], sizes = [8, 96], strides = [1, 1]} : vector<8x128xf32> to vector<8x96xf32>
    %70 = arith.negf %69 : vector<8x96xf32>
    %71 = math.exp %70 : vector<8x96xf32>
    %cst_16 = arith.constant 1.000000e+00 : f32
    %72 = vector.broadcast %cst_16 : f32 to vector<8x96xf32>
    %73 = arith.addf %72, %71 : vector<8x96xf32>
    %74 = arith.divf %72, %73 : vector<8x96xf32>
    %75 = vector.extract_strided_slice %68 {offsets = [0, 96], sizes = [8, 32], strides = [1, 1]} : vector<8x128xf32> to vector<8x32xf32>
    %76 = math.tanh %75 : vector<8x32xf32>
    %77 = vector.extract_strided_slice %74 {offsets = [0, 0], sizes = [8, 32], strides = [1, 1]} : vector<8x96xf32> to vector<8x32xf32>
    %78 = vector.extract_strided_slice %74 {offsets = [0, 32], sizes = [8, 32], strides = [1, 1]} : vector<8x96xf32> to vector<8x32xf32>
    %79 = vector.extract_strided_slice %74 {offsets = [0, 64], sizes = [8, 32], strides = [1, 1]} : vector<8x96xf32> to vector<8x32xf32>
    %80 = arith.mulf %78, %63 : vector<8x32xf32>
    %81 = arith.mulf %77, %76 : vector<8x32xf32>
    %82 = arith.addf %80, %81 : vector<8x32xf32>
    %83 = math.tanh %82 : vector<8x32xf32>
    %84 = arith.mulf %79, %83 : vector<8x32xf32>
    %85 = vector.extract_strided_slice %5 {offsets = [32, 0], sizes = [8, 128], strides = [1, 1]} : vector<64x128xf32> to vector<8x128xf32>
    %cst_17 = arith.constant dense<0.000000e+00> : vector<8x128xf32>
    %86 = tpu.matmul %84, %6, %cst_17 {dimension_numbers = #tpu.dot_dimension_numbers<[1], [0], [0], [1], [0, 0, 1, 1], [], []>} : vector<8x32xf32>, vector<32x128xf32>, vector<8x128xf32> -> vector<8x128xf32>
    %87 = arith.addf %85, %86 : vector<8x128xf32>
    %88 = vector.extract_strided_slice %87 {offsets = [0, 0], sizes = [8, 96], strides = [1, 1]} : vector<8x128xf32> to vector<8x96xf32>
    %89 = arith.negf %88 : vector<8x96xf32>
    %90 = math.exp %89 : vector<8x96xf32>
    %cst_18 = arith.constant 1.000000e+00 : f32
    %91 = vector.broadcast %cst_18 : f32 to vector<8x96xf32>
    %92 = arith.addf %91, %90 : vector<8x96xf32>
    %93 = arith.divf %91, %92 : vector<8x96xf32>
    %94 = vector.extract_strided_slice %87 {offsets = [0, 96], sizes = [8, 32], strides = [1, 1]} : vector<8x128xf32> to vector<8x32xf32>
    %95 = math.tanh %94 : vector<8x32xf32>
    %96 = vector.extract_strided_slice %93 {offsets = [0, 0], sizes = [8, 32], strides = [1, 1]} : vector<8x96xf32> to vector<8x32xf32>
    %97 = vector.extract_strided_slice %93 {offsets = [0, 32], sizes = [8, 32], strides = [1, 1]} : vector<8x96xf32> to vector<8x32xf32>
    %98 = vector.extract_strided_slice %93 {offsets = [0, 64], sizes = [8, 32], strides = [1, 1]} : vector<8x96xf32> to vector<8x32xf32>
    %99 = arith.mulf %97, %82 : vector<8x32xf32>
    %100 = arith.mulf %96, %95 : vector<8x32xf32>
    %101 = arith.addf %99, %100 : vector<8x32xf32>
    %102 = math.tanh %101 : vector<8x32xf32>
    %103 = arith.mulf %98, %102 : vector<8x32xf32>
    %104 = vector.extract_strided_slice %5 {offsets = [40, 0], sizes = [8, 128], strides = [1, 1]} : vector<64x128xf32> to vector<8x128xf32>
    %cst_19 = arith.constant dense<0.000000e+00> : vector<8x128xf32>
    %105 = tpu.matmul %103, %6, %cst_19 {dimension_numbers = #tpu.dot_dimension_numbers<[1], [0], [0], [1], [0, 0, 1, 1], [], []>} : vector<8x32xf32>, vector<32x128xf32>, vector<8x128xf32> -> vector<8x128xf32>
    %106 = arith.addf %104, %105 : vector<8x128xf32>
    %107 = vector.extract_strided_slice %106 {offsets = [0, 0], sizes = [8, 96], strides = [1, 1]} : vector<8x128xf32> to vector<8x96xf32>
    %108 = arith.negf %107 : vector<8x96xf32>
    %109 = math.exp %108 : vector<8x96xf32>
    %cst_20 = arith.constant 1.000000e+00 : f32
    %110 = vector.broadcast %cst_20 : f32 to vector<8x96xf32>
    %111 = arith.addf %110, %109 : vector<8x96xf32>
    %112 = arith.divf %110, %111 : vector<8x96xf32>
    %113 = vector.extract_strided_slice %106 {offsets = [0, 96], sizes = [8, 32], strides = [1, 1]} : vector<8x128xf32> to vector<8x32xf32>
    %114 = math.tanh %113 : vector<8x32xf32>
    %115 = vector.extract_strided_slice %112 {offsets = [0, 0], sizes = [8, 32], strides = [1, 1]} : vector<8x96xf32> to vector<8x32xf32>
    %116 = vector.extract_strided_slice %112 {offsets = [0, 32], sizes = [8, 32], strides = [1, 1]} : vector<8x96xf32> to vector<8x32xf32>
    %117 = vector.extract_strided_slice %112 {offsets = [0, 64], sizes = [8, 32], strides = [1, 1]} : vector<8x96xf32> to vector<8x32xf32>
    %118 = arith.mulf %116, %101 : vector<8x32xf32>
    %119 = arith.mulf %115, %114 : vector<8x32xf32>
    %120 = arith.addf %118, %119 : vector<8x32xf32>
    %121 = math.tanh %120 : vector<8x32xf32>
    %122 = arith.mulf %117, %121 : vector<8x32xf32>
    %123 = vector.extract_strided_slice %5 {offsets = [48, 0], sizes = [8, 128], strides = [1, 1]} : vector<64x128xf32> to vector<8x128xf32>
    %cst_21 = arith.constant dense<0.000000e+00> : vector<8x128xf32>
    %124 = tpu.matmul %122, %6, %cst_21 {dimension_numbers = #tpu.dot_dimension_numbers<[1], [0], [0], [1], [0, 0, 1, 1], [], []>} : vector<8x32xf32>, vector<32x128xf32>, vector<8x128xf32> -> vector<8x128xf32>
    %125 = arith.addf %123, %124 : vector<8x128xf32>
    %126 = vector.extract_strided_slice %125 {offsets = [0, 0], sizes = [8, 96], strides = [1, 1]} : vector<8x128xf32> to vector<8x96xf32>
    %127 = arith.negf %126 : vector<8x96xf32>
    %128 = math.exp %127 : vector<8x96xf32>
    %cst_22 = arith.constant 1.000000e+00 : f32
    %129 = vector.broadcast %cst_22 : f32 to vector<8x96xf32>
    %130 = arith.addf %129, %128 : vector<8x96xf32>
    %131 = arith.divf %129, %130 : vector<8x96xf32>
    %132 = vector.extract_strided_slice %125 {offsets = [0, 96], sizes = [8, 32], strides = [1, 1]} : vector<8x128xf32> to vector<8x32xf32>
    %133 = math.tanh %132 : vector<8x32xf32>
    %134 = vector.extract_strided_slice %131 {offsets = [0, 0], sizes = [8, 32], strides = [1, 1]} : vector<8x96xf32> to vector<8x32xf32>
    %135 = vector.extract_strided_slice %131 {offsets = [0, 32], sizes = [8, 32], strides = [1, 1]} : vector<8x96xf32> to vector<8x32xf32>
    %136 = vector.extract_strided_slice %131 {offsets = [0, 64], sizes = [8, 32], strides = [1, 1]} : vector<8x96xf32> to vector<8x32xf32>
    %137 = arith.mulf %135, %120 : vector<8x32xf32>
    %138 = arith.mulf %134, %133 : vector<8x32xf32>
    %139 = arith.addf %137, %138 : vector<8x32xf32>
    %140 = math.tanh %139 : vector<8x32xf32>
    %141 = arith.mulf %136, %140 : vector<8x32xf32>
    %142 = vector.extract_strided_slice %5 {offsets = [56, 0], sizes = [8, 128], strides = [1, 1]} : vector<64x128xf32> to vector<8x128xf32>
    %cst_23 = arith.constant dense<0.000000e+00> : vector<8x128xf32>
    %143 = tpu.matmul %141, %6, %cst_23 {dimension_numbers = #tpu.dot_dimension_numbers<[1], [0], [0], [1], [0, 0, 1, 1], [], []>} : vector<8x32xf32>, vector<32x128xf32>, vector<8x128xf32> -> vector<8x128xf32>
    %144 = arith.addf %142, %143 : vector<8x128xf32>
    %145 = vector.extract_strided_slice %144 {offsets = [0, 0], sizes = [8, 96], strides = [1, 1]} : vector<8x128xf32> to vector<8x96xf32>
    %146 = arith.negf %145 : vector<8x96xf32>
    %147 = math.exp %146 : vector<8x96xf32>
    %cst_24 = arith.constant 1.000000e+00 : f32
    %148 = vector.broadcast %cst_24 : f32 to vector<8x96xf32>
    %149 = arith.addf %148, %147 : vector<8x96xf32>
    %150 = arith.divf %148, %149 : vector<8x96xf32>
    %151 = vector.extract_strided_slice %144 {offsets = [0, 96], sizes = [8, 32], strides = [1, 1]} : vector<8x128xf32> to vector<8x32xf32>
    %152 = math.tanh %151 : vector<8x32xf32>
    %153 = vector.extract_strided_slice %150 {offsets = [0, 0], sizes = [8, 32], strides = [1, 1]} : vector<8x96xf32> to vector<8x32xf32>
    %154 = vector.extract_strided_slice %150 {offsets = [0, 32], sizes = [8, 32], strides = [1, 1]} : vector<8x96xf32> to vector<8x32xf32>
    %155 = vector.extract_strided_slice %150 {offsets = [0, 64], sizes = [8, 32], strides = [1, 1]} : vector<8x96xf32> to vector<8x32xf32>
    %156 = arith.mulf %154, %139 : vector<8x32xf32>
    %157 = arith.mulf %153, %152 : vector<8x32xf32>
    %158 = arith.addf %156, %157 : vector<8x32xf32>
    %159 = math.tanh %158 : vector<8x32xf32>
    %160 = arith.mulf %155, %159 : vector<8x32xf32>
    %161 = vector.extract_strided_slice %160 {offsets = [0, 0], sizes = [2, 32], strides = [1, 1]} : vector<8x32xf32> to vector<2x32xf32>
    %c0_25 = arith.constant 0 : index
    %c0_26 = arith.constant 0 : index
    %162 = vector.load %arg4[%c0_25, %c0_26] : memref<2x32xf32, #tpu.memory_space<vmem>>, vector<2x32xf32>
    tpu.vector_store %arg4[%c0_25, %c0_26], %161 {strides = array<i32>} : memref<2x32xf32, #tpu.memory_space<vmem>>, vector<2x32xf32>,
    return
  }
}

</mosaic_0001>

<bundles_post_ra>
// kernel: encoder_forward.1
= control target key start
LH: loop header
LB: loop body
LE: loop exit
PB: predicated region body
PF: predicated region fallthrough
CT: control target
= control target key end

     0   :  { %vm59_vm0 = vcmask 1043456   ;;  %vm34_vm1 = vcmask 31744   ;;  %v1258_v2 = vmov 0.0   ;;  %s1491_s0 = inlined_call_operand.vmem [shape: f32[64,4], index: 0, kind: input, shape index: {}]   ;;  %s1492_s1 = inlined_call_operand.vmem [shape: f32[4,128], index: 1, kind: input, shape index: {}]   ;;  %s1493_s2 = inlined_call_operand.vmem [shape: f32[32,128], index: 2, kind: input, shape index: {}]   ;;  %s1494_s3 = inlined_call_operand.vmem [shape: f32[1,128], index: 3, kind: input, shape index: {}]   ;;  %s1495_s4 = inlined_call_operand.hbm [shape: f32[2,32], index: 4, kind: output, shape index: {}]  }
   0x1   :  { %v26_v0 = vld [vmem:[%s1492_s1] sm:$0xf]  ;;  %1079 = vmatprep.subr.mxu1 %v1258_v2  ;;  %v1298_v3 = vld [vmem:[%s1493_s2 + $0x18] sm:$0xff]  ;;  %v19_v4 = vld [vmem:[%s1491_s0 + $0x8] sm:$0xff] }
   0x2   :  { %v18_v1 = vld [vmem:[%s1491_s0] sm:$0xff]  ;;  %1065 = vmatprep.subr.msk.mxu0 %vm59_vm0, %v26_v0  ;;  %v1307_v5 = vld [vmem:[%s1493_s2 + $0x10] sm:$0xff] }
   0x3   :  { %1066 = vmatpush3.msk.msra.mxu0 %vm59_vm0, %v26_v0  ;;  %1067 = vmatprep.mubr.msk.f32.mxu0 %vm34_vm1, %v18_v1 }
   0x4   :  { %9 = vsyncpa [#allocation3], 0  ;;  %1080 = vmatpush3.msra.mxu1 %v1298_v3  ;;  %1068 = vmatmul.mubr.msk.f32.vlgmr.msra.gmra.mxu0 %vm34_vm1, %v19_v4  ;;  %v1315_v6 = vld [vmem:[%s1493_s2 + $0x8] sm:$0xff]  ;;  %vm1259_vm2 = vmmov 0   ;;  %v1325_v7 = vld [vmem:[%s1493_s2] sm:$0xff]  ;;  %s1260_s29 = smov 32  }
   0x5   :  { %1081 = vmatprep.subr.mxu1 %v1258_v2  ;;  %1087 = vmatprep.mubr.msk.f32.mxu1 %vm1259_vm2, %v1258_v2  ;;  %v1353_v9 = vld [vmem:[%s1494_s3] ss:$0 sm:$0xff]  ;;  %s1261_s3 = smov 64   ;;  %vm172_vm3 = vcmask 261120   ;;  %v20_v43 = vld [vmem:[%s1491_s0 + $0x10] sm:$0xff]  ;;  %v21_v44 = vld [vmem:[%s1491_s0 + $0x18] sm:$0xff] }
   0x6   :  { %1082 = vmatpush3.msra.mxu1 %v1307_v5  ;;  %1101 = vmatprep.subr.mxu0 %v1258_v2  ;;  %v22_v45 = vld [vmem:[%s1491_s0 + $0x20] sm:$0xff]  ;;  %v23_v46 = vld [vmem:[%s1491_s0 + $0x28] sm:$0xff]  ;;  %v24_v47 = vld [vmem:[%s1491_s0 + $0x30] sm:$0xff]  ;;  %vm975_vm4 = vcmask 254976  }
   0x7   :  { %1083 = vmatprep.subr.mxu1 %v1258_v2  ;;  %1102 = vmatpush3.msra.mxu0 %v1298_v3  ;;  %v25_v48 = vld [vmem:[%s1491_s0 + $0x38] sm:$0xff]  ;;  %s1262_s0 = smov [#allocation2]  }
   0x8   :  { %1084 = vmatpush3.msra.mxu1 %v1315_v6  ;;  %1103 = vmatprep.subr.mxu0 %v1258_v2  ;;  %s983_s16 = sshll.u32 %s1262_s0, 4  ;;  %s984_s16 = int_to_ptr.vmem [resolvable:$true] %s983_s16 }
   0x9   :  { %1085 = vmatprep.subr.mxu1 %v1258_v2  ;;  %1104 = vmatpush3.msra.mxu0 %v1307_v5  ;;  %s1236_s17 = scalar_lea.vmem %s984_s16, 32  ;;  %p1241_p1 = scmp.lt.s32.totalorder %s984_s16, %s984_s16 }
   0xa   :  { %1086 = vmatpush3.msra.mxu1 %v1325_v7  ;;  %1105 = vmatprep.subr.mxu0 %v1258_v2  ;;  %p1237_p0 = scmp.ne.s32.totalorder %s984_s16, %s1236_s17  ;;  %p1242_p2 = scmp.lt.s32.totalorder %s1236_s17, %s1236_s17 }
   0xb   :  { %1088 = vmatmul.mubr.f32.vlgmr.msra.gmra.mxu1 %v1258_v2  ;;  %1090 = vmatprep.subr.mxu1 %v1258_v2 }
   0xc   :  { %1091 = vmatpush3.msra.mxu1 %v1298_v3  ;;  %1098 = vmatprep.mubr.msk.f32.mxu1 %vm1259_vm2, %v1258_v2  ;;  %p1243_p3 = por %p1242_p2, %p1241_p1 }
   0xd   :  { %1092 = vmatprep.subr.mxu1 %v1258_v2  ;;  %1106 = vmatpush3.msra.mxu0 %v1315_v6 }
   0xe   :  { %1093 = vmatpush3.msra.mxu1 %v1307_v5  ;;  %1107 = vmatprep.subr.mxu0 %v1258_v2  ;;  %p1244_p4 = pnand %p1243_p3, %p1237_p0 }
   0xf   :  { %1094 = vmatprep.subr.mxu1 %v1258_v2  ;;  %1108 = vmatpush3.msra.mxu0 %v1325_v7 }
  0x10   :  { %1095 = vmatpush3.msra.mxu1 %v1315_v6  ;;  %1123 = vmatprep.subr.mxu0 %v1258_v2 }
  0x11   :  { %1096 = vmatprep.subr.mxu1 %v1258_v2  ;;  %1070 = vmatprep.mubr.msk.f32.mxu0 %vm34_vm1, %v20_v43 }
  0x12   :  { %1097 = vmatpush3.msra.mxu1 %v1325_v7  ;;  %1071 = vmatmul.mubr.msk.f32.gmra.mxu0 %vm34_vm1, %v21_v44 }
  0x13   :  { %1112 = vmatprep.subr.mxu1 %v1258_v2  ;;  %1073 = vmatprep.mubr.msk.f32.mxu0 %vm34_vm1, %v22_v45 }
  0x16   :  { %1074 = vmatmul.mubr.msk.f32.gmra.mxu0 %vm34_vm1, %v23_v46 }
  0x17   :  { %1076 = vmatprep.mubr.msk.f32.mxu0 %vm34_vm1, %v24_v47 }
  0x1a   :  { %1077 = vmatmul.mubr.msk.f32.gmra.mxu0 %vm34_vm1, %v25_v48 }
  0x1b   :  { %1109 = vmatprep.mubr.msk.f32.mxu0 %vm1259_vm2, %v1258_v2 }
  0xc4   :  { %v1069_v8 = vpop.f32.mrf.mxu0 }
  0xc5   :  { %v135_v29 = vadd.f32 %v1069_v8, %v1353_v9 }
  0xc6   :  { %v129_v10 = vpop.f32.mrf.mxu0 }
  0xc7   :  { %v130_v11 = vadd.f32 %v1353_v9, %v129_v10 }
  0xcb   :  { %v242_v12 = vpop.f32.mrf.mxu1 }
  0xcc   :  { %v246_v13 = vadd.f32 %v242_v12, %v130_v11 }
  0xcd   :  { %v1089_v14 = vpop.f32.mrf.mxu1 }
  0xce   :  { %1172 = vtanh.f32 %v246_v13  ;;  %v1001_v16 = vmul.f32 -1.442695, %v246_v13 }
  0xd0   :  { %1174 = vpow2.f32 %v1001_v16 }
  0xd2   :  { %v1072_v53 = vpop.f32.mrf.mxu0 }
  0xd4   :  { %v139_v54 = vpop.f32.mrf.mxu0 }
  0xd5   :  { %v140_v59 = vadd.f32 %v1353_v9, %v139_v54 }
  0xd6   :  { %v1413_v55 = vpop.f32.mrf.mxu0 }
  0xd8   :  { %v1415_v56 = vpop.f32.mrf.mxu0 }
  0xda   :  { %v1417_v57 = vpop.f32.mrf.mxu0 }
  0xdb   :  { %v1173_v15 = vpop.eup %1172 }
  0xdc   :  { %256 = vrot.lane.b32.xlu0 %v1173_v15, %s1260_s29  ;;  %v1419_v58 = vpop.f32.mrf.mxu0 }
  0xdd   :  { %v1175_v17 = vpop.eup %1174 }
  0xde   :  { %v250_v18 = vadd.f32 1.0, %v1175_v17 }
  0xe0   :  { %1176 = vrcp.f32 %v250_v18 }
  0xed   :  { %v1177_v19 = vpop.eup %1176 }
  0xee   :  { %v254_v22 = vmul.f32 0.0, %v1177_v19 }
 0x14e   :  { %v257_v20 = vpop.permute.xlu0 %256 }
 0x14f   :  { %v259_v21 = vmul.f32 %v1177_v19, %v257_v20 }
 0x151   :  { %261 = vrot.lane.b32.xlu0 %v259_v21, %s1260_s29 }
 0x1c3   :  { %v262_v23 = vpop.permute.xlu0 %261 }
 0x1c4   :  { %v264_v24 = vadd.f32 %v262_v23, %v254_v22 }
 0x1c6   :  { %1178 = vtanh.f32 %v264_v24 }
 0x1d3   :  { %v1179_v25 = vpop.eup %1178 }
 0x1d4   :  { %267 = vrot.lane.b32.xlu1 %v1179_v25, %s1260_s29 }
 0x246   :  { %v268_v26 = vpop.permute.xlu1 %267 }
 0x247   :  { %v270_v27 = vmul.f32 %v1177_v19, %v268_v26  ;;  %v145_v19 = vadd.f32 %v1072_v53, %v1353_v9 }
 0x249   :  { %272 = vrot.lane.b32.xlu1 %v270_v27, %s1261_s3 }
 0x2bb   :  { %v273_v28 = vpop.permute.xlu1 %272 }
 0x2bc   :  { %1099 = vmatmul.mubr.msk.f32.vlgmr.msra.gmra.mxu1 %vm172_vm3, %v273_v28 }
 0x2bd   :  { %1113 = vmatpush3.msra.mxu1 %v1298_v3  ;;  %1120 = vmatprep.mubr.msk.f32.mxu1 %vm1259_vm2, %v1258_v2 }
 0x2be   :  { %1114 = vmatprep.subr.mxu1 %v1258_v2 }
 0x2bf   :  { %1115 = vmatpush3.msra.mxu1 %v1307_v5 }
 0x2c0   :  { %1116 = vmatprep.subr.mxu1 %v1258_v2 }
 0x2c1   :  { %1117 = vmatpush3.msra.mxu1 %v1315_v6 }
 0x2c2   :  { %1118 = vmatprep.subr.mxu1 %v1258_v2 }
 0x2c3   :  { %1119 = vmatpush3.msra.mxu1 %v1325_v7 }
 0x2c4   :  { %1134 = vmatprep.subr.mxu1 %v1258_v2 }
 0x37c   :  { %v342_v30 = vpop.f32.mrf.mxu1 }
 0x37d   :  { %v346_v31 = vadd.f32 %v342_v30, %v135_v29 }
 0x37e   :  { %v1100_v32 = vpop.f32.mrf.mxu1 }
 0x37f   :  { %1180 = vtanh.f32 %v346_v31  ;;  %v1003_v34 = vmul.f32 -1.442695, %v346_v31 }
 0x381   :  { %1182 = vpow2.f32 %v1003_v34 }
 0x38c   :  { %v1181_v33 = vpop.eup %1180 }
 0x38d   :  { %356 = vrot.lane.b32.xlu0 %v1181_v33, %s1260_s29 }
 0x38e   :  { %v1183_v35 = vpop.eup %1182 }
 0x38f   :  { %v350_v36 = vadd.f32 1.0, %v1183_v35 }
 0x391   :  { %1184 = vrcp.f32 %v350_v36 }
 0x39e   :  { %v1185_v37 = vpop.eup %1184 }
 0x39f   :  { %v354_v40 = vmul.f32 %v1185_v37, %v264_v24 }
 0x3ff   :  { %v357_v38 = vpop.permute.xlu0 %356 }
 0x400   :  { %v359_v39 = vmul.f32 %v1185_v37, %v357_v38 }
 0x402   :  { %361 = vrot.lane.b32.xlu1 %v359_v39, %s1260_s29 }
 0x474   :  { %v362_v41 = vpop.permute.xlu1 %361 }
 0x475   :  { %v364_v42 = vadd.f32 %v362_v41, %v354_v40 }
 0x477   :  { %1186 = vtanh.f32 %v364_v42 }
 0x484   :  { %v1187_v49 = vpop.eup %1186 }
 0x485   :  { %367 = vrot.lane.b32.xlu0 %v1187_v49, %s1260_s29 }
 0x4f7   :  { %v368_v50 = vpop.permute.xlu0 %367 }
 0x4f8   :  { %v370_v51 = vmul.f32 %v1185_v37, %v368_v50  ;;  %v150_v37 = vadd.f32 %v1353_v9, %v1415_v56  ;;  %v155_v56 = vadd.f32 %v1413_v55, %v1353_v9 }
 0x4fa   :  { %372 = vrot.lane.b32.xlu1 %v370_v51, %s1261_s3 }
 0x56c   :  { %v373_v52 = vpop.permute.xlu1 %372 }
 0x56d   :  { %1110 = vmatmul.mubr.msk.f32.vlgmr.msra.gmra.mxu0 %vm172_vm3, %v373_v52 }
 0x56e   :  { %1124 = vmatpush3.msra.mxu0 %v1298_v3  ;;  %1131 = vmatprep.mubr.msk.f32.mxu0 %vm1259_vm2, %v1258_v2 }
 0x56f   :  { %1125 = vmatprep.subr.mxu0 %v1258_v2 }
 0x570   :  { %1126 = vmatpush3.msra.mxu0 %v1307_v5 }
 0x571   :  { %1127 = vmatprep.subr.mxu0 %v1258_v2 }
 0x572   :  { %1128 = vmatpush3.msra.mxu0 %v1315_v6 }
 0x573   :  { %1129 = vmatprep.subr.mxu0 %v1258_v2 }
 0x574   :  { %1130 = vmatpush3.msra.mxu0 %v1325_v7 }
 0x575   :  { %1145 = vmatprep.subr.mxu0 %v1258_v2 }
 0x62d   :  { %v442_v60 = vpop.f32.mrf.mxu0 }
 0x62e   :  { %v446_v61 = vadd.f32 %v442_v60, %v140_v59 }
 0x62f   :  { %v1111_v62 = vpop.f32.mrf.mxu0 }
 0x630   :  { %1188 = vtanh.f32 %v446_v61  ;;  %v1005_v0 = vmul.f32 -1.442695, %v446_v61 }
 0x632   :  { %1190 = vpow2.f32 %v1005_v0 }
 0x63d   :  { %v1189_v63 = vpop.eup %1188 }
 0x63e   :  { %456 = vrot.lane.b32.xlu0 %v1189_v63, %s1260_s29 }
 0x63f   :  { %v1191_v1 = vpop.eup %1190 }
 0x640   :  { %v450_v4 = vadd.f32 1.0, %v1191_v1 }
 0x642   :  { %1192 = vrcp.f32 %v450_v4 }
 0x64f   :  { %v1193_v8 = vpop.eup %1192 }
 0x650   :  { %v454_v12 = vmul.f32 %v1193_v8, %v364_v42 }
 0x6b0   :  { %v457_v10 = vpop.permute.xlu0 %456 }
 0x6b1   :  { %v459_v11 = vmul.f32 %v1193_v8, %v457_v10 }
 0x6b3   :  { %461 = vrot.lane.b32.xlu1 %v459_v11, %s1260_s29 }
 0x725   :  { %v462_v13 = vpop.permute.xlu1 %461 }
 0x726   :  { %v464_v14 = vadd.f32 %v462_v13, %v454_v12  ;;  %v160_v12 = vadd.f32 %v1353_v9, %v1419_v58 }
 0x728   :  { %1194 = vtanh.f32 %v464_v14 }
 0x735   :  { %v1195_v15 = vpop.eup %1194 }
 0x736   :  { %467 = vrot.lane.b32.xlu0 %v1195_v15, %s1260_s29 }
 0x7a8   :  { %v468_v16 = vpop.permute.xlu0 %467 }
 0x7a9   :  { %v470_v17 = vmul.f32 %v1193_v8, %v468_v16 }
 0x7ab   :  { %472 = vrot.lane.b32.xlu1 %v470_v17, %s1261_s3 }
 0x81d   :  { %v473_v18 = vpop.permute.xlu1 %472 }
 0x81e   :  { %1121 = vmatmul.mubr.msk.f32.vlgmr.msra.gmra.mxu1 %vm172_vm3, %v473_v18 }
 0x81f   :  { %1135 = vmatpush3.msra.mxu1 %v1298_v3  ;;  %1142 = vmatprep.mubr.msk.f32.mxu1 %vm1259_vm2, %v1258_v2 }
 0x820   :  { %1136 = vmatprep.subr.mxu1 %v1258_v2 }
 0x821   :  { %1137 = vmatpush3.msra.mxu1 %v1307_v5 }
 0x822   :  { %1138 = vmatprep.subr.mxu1 %v1258_v2 }
 0x823   :  { %1139 = vmatpush3.msra.mxu1 %v1315_v6 }
 0x824   :  { %1140 = vmatprep.subr.mxu1 %v1258_v2 }
 0x825   :  { %1141 = vmatpush3.msra.mxu1 %v1325_v7 }
 0x826   :  { %1156 = vmatprep.subr.mxu1 %v1258_v2 }
 0x8de   :  { %v542_v20 = vpop.f32.mrf.mxu1 }
 0x8df   :  { %v546_v21 = vadd.f32 %v542_v20, %v145_v19 }
 0x8e0   :  { %v1122_v22 = vpop.f32.mrf.mxu1 }
 0x8e1   :  { %1196 = vtanh.f32 %v546_v21  ;;  %v1007_v24 = vmul.f32 -1.442695, %v546_v21 }
 0x8e3   :  { %1198 = vpow2.f32 %v1007_v24 }
 0x8ee   :  { %v1197_v23 = vpop.eup %1196 }
 0x8ef   :  { %556 = vrot.lane.b32.xlu0 %v1197_v23, %s1260_s29 }
 0x8f0   :  { %v1199_v25 = vpop.eup %1198 }
 0x8f1   :  { %v550_v26 = vadd.f32 1.0, %v1199_v25 }
 0x8f3   :  { %1200 = vrcp.f32 %v550_v26 }
 0x900   :  { %v1201_v27 = vpop.eup %1200 }
 0x901   :  { %v554_v30 = vmul.f32 %v1201_v27, %v464_v14 }
 0x961   :  { %v557_v28 = vpop.permute.xlu0 %556 }
 0x962   :  { %v559_v29 = vmul.f32 %v1201_v27, %v557_v28 }
 0x964   :  { %561 = vrot.lane.b32.xlu1 %v559_v29, %s1260_s29  ;;  %v165_v29 = vadd.f32 %v1417_v57, %v1353_v9 }
 0x9d6   :  { %v562_v31 = vpop.permute.xlu1 %561 }
 0x9d7   :  { %v564_v32 = vadd.f32 %v562_v31, %v554_v30 }
 0x9d9   :  { %1202 = vtanh.f32 %v564_v32 }
 0x9e6   :  { %v1203_v33 = vpop.eup %1202 }
 0x9e7   :  { %567 = vrot.lane.b32.xlu0 %v1203_v33, %s1260_s29 }
 0xa59   :  { %v568_v34 = vpop.permute.xlu0 %567 }
 0xa5a   :  { %v570_v35 = vmul.f32 %v1201_v27, %v568_v34 }
 0xa5c   :  { %572 = vrot.lane.b32.xlu1 %v570_v35, %s1261_s3 }
 0xace   :  { %v573_v36 = vpop.permute.xlu1 %572 }
 0xacf   :  { %1132 = vmatmul.mubr.msk.f32.vlgmr.msra.gmra.mxu0 %vm172_vm3, %v573_v36 }
 0xad0   :  { %1146 = vmatpush3.msra.mxu0 %v1298_v3  ;;  %1153 = vmatprep.mubr.msk.f32.mxu0 %vm1259_vm2, %v1258_v2 }
 0xad1   :  { %1147 = vmatprep.subr.mxu0 %v1258_v2 }
 0xad2   :  { %1148 = vmatpush3.msra.mxu0 %v1307_v5 }
 0xad3   :  { %1149 = vmatprep.subr.mxu0 %v1258_v2 }
 0xad4   :  { %1150 = vmatpush3.msra.mxu0 %v1315_v6 }
 0xad5   :  { %1151 = vmatprep.subr.mxu0 %v1258_v2 }
 0xad6   :  { %1152 = vmatpush3.msra.mxu0 %v1325_v7 }
 0xb8f   :  { %v642_v38 = vpop.f32.mrf.mxu0 }
 0xb90   :  { %v646_v39 = vadd.f32 %v642_v38, %v150_v37 }
 0xb91   :  { %v1133_v40 = vpop.f32.mrf.mxu0 }
 0xb92   :  { %1204 = vtanh.f32 %v646_v39  ;;  %v1009_v42 = vmul.f32 -1.442695, %v646_v39 }
 0xb94   :  { %1206 = vpow2.f32 %v1009_v42 }
 0xb9f   :  { %v1205_v41 = vpop.eup %1204 }
 0xba0   :  { %656 = vrot.lane.b32.xlu0 %v1205_v41, %s1260_s29 }
 0xba1   :  { %v1207_v43 = vpop.eup %1206 }
 0xba2   :  { %v650_v44 = vadd.f32 1.0, %v1207_v43 }
 0xba4   :  { %1208 = vrcp.f32 %v650_v44 }
 0xbb1   :  { %v1209_v45 = vpop.eup %1208 }
 0xbb2   :  { %v654_v48 = vmul.f32 %v1209_v45, %v564_v32 }
 0xc12   :  { %v657_v46 = vpop.permute.xlu0 %656 }
 0xc13   :  { %v659_v47 = vmul.f32 %v1209_v45, %v657_v46 }
 0xc15   :  { %661 = vrot.lane.b32.xlu1 %v659_v47, %s1260_s29 }
 0xc87   :  { %v662_v49 = vpop.permute.xlu1 %661 }
 0xc88   :  { %v664_v50 = vadd.f32 %v662_v49, %v654_v48 }
 0xc8a   :  { %1210 = vtanh.f32 %v664_v50 }
 0xc97   :  { %v1211_v51 = vpop.eup %1210 }
 0xc98   :  { %667 = vrot.lane.b32.xlu0 %v1211_v51, %s1260_s29 }
 0xd0a   :  { %v668_v52 = vpop.permute.xlu0 %667 }
 0xd0b   :  { %v670_v53 = vmul.f32 %v1209_v45, %v668_v52 }
 0xd0d   :  { %672 = vrot.lane.b32.xlu1 %v670_v53, %s1261_s3 }
 0xd7f   :  { %v673_v54 = vpop.permute.xlu1 %672 }
 0xd80   :  { %1143 = vmatmul.mubr.msk.f32.vlgmr.msra.gmra.mxu1 %vm172_vm3, %v673_v54 }
 0xd81   :  { %1157 = vmatpush3.msra.mxu1 %v1298_v3  ;;  %1164 = vmatprep.mubr.msk.f32.mxu1 %vm1259_vm2, %v1258_v2 }
 0xd82   :  { %1158 = vmatprep.subr.mxu1 %v1258_v2 }
 0xd83   :  { %1159 = vmatpush3.msra.mxu1 %v1307_v5 }
 0xd84   :  { %1160 = vmatprep.subr.mxu1 %v1258_v2 }
 0xd85   :  { %1161 = vmatpush3.msra.mxu1 %v1315_v6 }
 0xd86   :  { %1162 = vmatprep.subr.mxu1 %v1258_v2 }
 0xd87   :  { %1163 = vmatpush3.msra.mxu1 %v1325_v7 }
 0xe40   :  { %v742_v59 = vpop.f32.mrf.mxu1 }
 0xe41   :  { %v746_v3 = vadd.f32 %v742_v59, %v155_v56 }
 0xe42   :  { %v1144_v60 = vpop.f32.mrf.mxu1 }
 0xe43   :  { %1212 = vtanh.f32 %v746_v3  ;;  %v1011_v62 = vmul.f32 -1.442695, %v746_v3 }
 0xe45   :  { %1214 = vpow2.f32 %v1011_v62 }
 0xe50   :  { %v1213_v61 = vpop.eup %1212 }
 0xe51   :  { %756 = vrot.lane.b32.xlu0 %v1213_v61, %s1260_s29 }
 0xe52   :  { %v1215_v5 = vpop.eup %1214 }
 0xe53   :  { %v750_v63 = vadd.f32 1.0, %v1215_v5 }
 0xe55   :  { %1216 = vrcp.f32 %v750_v63 }
 0xe62   :  { %v1217_v6 = vpop.eup %1216 }
 0xe63   :  { %v754_v7 = vmul.f32 %v1217_v6, %v664_v50 }
 0xec3   :  { %v757_v0 = vpop.permute.xlu0 %756 }
 0xec4   :  { %v759_v2 = vmul.f32 %v1217_v6, %v757_v0 }
 0xec6   :  { %761 = vrot.lane.b32.xlu1 %v759_v2, %s1260_s29 }
 0xf38   :  { %v762_v1 = vpop.permute.xlu1 %761 }
 0xf39   :  { %v764_v55 = vadd.f32 %v762_v1, %v754_v7 }
 0xf3b   :  { %1218 = vtanh.f32 %v764_v55 }
 0xf48   :  { %v1219_v4 = vpop.eup %1218 }
 0xf49   :  { %767 = vrot.lane.b32.xlu0 %v1219_v4, %s1260_s29 }
 0xfbb   :  { %v768_v8 = vpop.permute.xlu0 %767 }
 0xfbc   :  { %v770_v10 = vmul.f32 %v1217_v6, %v768_v8 }
 0xfbe   :  { %772 = vrot.lane.b32.xlu1 %v770_v10, %s1261_s3 }
0x1030   :  { %v773_v11 = vpop.permute.xlu1 %772 }
0x1031   :  { %1154 = vmatmul.mubr.msk.f32.vlgmr.msra.gmra.mxu0 %vm172_vm3, %v773_v11 }
0x10f1   :  { %v842_v13 = vpop.f32.mrf.mxu0 }
0x10f2   :  { %v846_v14 = vadd.f32 %v842_v13, %v160_v12 }
0x10f3   :  { %v1155_v15 = vpop.f32.mrf.mxu0 }
0x10f4   :  { %1220 = vtanh.f32 %v846_v14  ;;  %v1013_v17 = vmul.f32 -1.442695, %v846_v14 }
0x10f6   :  { %1222 = vpow2.f32 %v1013_v17 }
0x1101   :  { %v1221_v16 = vpop.eup %1220 }
0x1102   :  { %856 = vrot.lane.b32.xlu0 %v1221_v16, %s1260_s29 }
0x1103   :  { %v1223_v18 = vpop.eup %1222 }
0x1104   :  { %v850_v19 = vadd.f32 1.0, %v1223_v18 }
0x1106   :  { %1224 = vrcp.f32 %v850_v19 }
0x1113   :  { %v1225_v20 = vpop.eup %1224 }
0x1114   :  { %v854_v23 = vmul.f32 %v1225_v20, %v764_v55 }
0x1174   :  { %v857_v21 = vpop.permute.xlu0 %856 }
0x1175   :  { %v859_v22 = vmul.f32 %v1225_v20, %v857_v21 }
0x1177   :  { %861 = vrot.lane.b32.xlu1 %v859_v22, %s1260_s29 }
0x11e9   :  { %v862_v24 = vpop.permute.xlu1 %861 }
0x11ea   :  { %v864_v58 = vadd.f32 %v862_v24, %v854_v23 }
0x11ec   :  { %1226 = vtanh.f32 %v864_v58 }
0x11f9   :  { %v1227_v25 = vpop.eup %1226 }
0x11fa   :  { %867 = vrot.lane.b32.xlu0 %v1227_v25, %s1260_s29 }
0x126c   :  { %v868_v26 = vpop.permute.xlu0 %867 }
0x126d   :  { %v870_v27 = vmul.f32 %v1225_v20, %v868_v26 }
0x126f   :  { %872 = vrot.lane.b32.xlu1 %v870_v27, %s1261_s3 }
0x12e1   :  { %v873_v28 = vpop.permute.xlu1 %872 }
0x12e2   :  { %1165 = vmatmul.mubr.msk.f32.vlgmr.msra.gmra.mxu1 %vm172_vm3, %v873_v28 }
0x13a2   :  { %v942_v30 = vpop.f32.mrf.mxu1 }
0x13a3   :  { %v946_v31 = vadd.f32 %v942_v30, %v165_v29 }
0x13a4   :  { %v1166_v32 = vpop.f32.mrf.mxu1 }
0x13a5   :  { %1228 = vtanh.f32 %v946_v31  ;;  %v1015_v34 = vmul.f32 -1.442695, %v946_v31 }
0x13a7   :  { %1230 = vpow2.f32 %v1015_v34 }
0x13b2   :  { %v1229_v33 = vpop.eup %1228 }
0x13b3   :  { %956 = vrot.lane.b32.xlu0 %v1229_v33, %s1260_s29 }
0x13b4   :  { %v1231_v35 = vpop.eup %1230 }
0x13b5   :  { %v950_v36 = vadd.f32 1.0, %v1231_v35 }
0x13b7   :  { %1232 = vrcp.f32 %v950_v36 }
0x13c4   :  { %v1233_v37 = vpop.eup %1232 }
0x13c5   :  { %v954_v40 = vmul.f32 %v1233_v37, %v864_v58 }
0x1425   :  { %v957_v38 = vpop.permute.xlu0 %956 }
0x1426   :  { %v959_v39 = vmul.f32 %v1233_v37, %v957_v38 }
0x1428   :  { %961 = vrot.lane.b32.xlu1 %v959_v39, %s1260_s29 }
0x149a   :  { %v962_v41 = vpop.permute.xlu1 %961 }
0x149b   :  { %v964_v9 = vadd.f32 %v962_v41, %v954_v40 }
0x149d   :  { %1234 = vtanh.f32 %v964_v9 }
0x14aa   :  { %v1235_v57 = vpop.eup %1234 }
0x14ab   :  { %967 = vrot.lane.b32.xlu0 %v1235_v57, %s1260_s29 }
0x151d   :  { %v968_v42 = vpop.permute.xlu0 %967 }
0x151e   :  { %v970_v43 = vmul.f32 %v1233_v37, %v968_v42 }
0x1520   :  { %972 = vrot.lane.b32.xlu1 %v970_v43, %s1261_s3 }
0x1592   :  { %v973_v44 = vpop.permute.xlu1 %972 }
0x1593   :  { %976 = vst.msk [vmem:[#allocation2] sm:$0x3] %vm975_vm4, %v973_v44 }
0x1594   :  { %1247 = shalt.err (!%p1244_p4)
}
0x1595   :  { %986 = dma.vmem_to_hbm [thread:$0]  %s984_s16, 32, %s1495_s4, [#allocation3]  }
0x1596   :  { %1256 = dma.done.wait [#allocation3], 32  }
0x1597   :  { %1257 = vsyncadd [#allocation3], 4294967264 }
0x1598   :  { %990 = vsyncpa [#allocation3], 1 }

</bundles_post_ra>
